<compile_context>
chip_gen: v6e
topology: v6e:2x2x1
jax: 0.10.0
libtpu: 0.0.40
codegen_flags: <defaults>
</compile_context>

<pallas_src>
import functools

import jax
import jax.numpy as jnp
import numpy as np
from jax.experimental import pallas as pl
from jax.experimental.pallas import tpu as pltpu


def _round_up(x, m):
    return ((x + m - 1) // m) * m


def pooling_kernel(w_ref, h_ref, out_ref, acc_ref, *, n_tokens, tok_tile):
    """Weighted token reduction: acc[0, :] += sum_t w[t] * hidden[t, :] (MXU matvec)."""
    k = pl.program_id(1)
    nk = pl.num_programs(1)

    @pl.when(k == 0)
    def _init():
        acc_ref[...] = jnp.zeros_like(acc_ref)

    rem = n_tokens % tok_tile  # static Python int

    if rem == 0:
        # Every tile is full: single MXU matvec per step, no masking.
        acc_ref[...] += jnp.dot(w_ref[0], h_ref[0],
                                preferred_element_type=jnp.float32)
    else:
        @pl.when(k < nk - 1)
        def _full_tile():
            acc_ref[...] += jnp.dot(w_ref[0], h_ref[0],
                                    preferred_element_type=jnp.float32)

        @pl.when(k == nk - 1)
        def _partial_tile():
            # The hidden array is NOT padded in HBM; the tail of this VMEM tile is
            # unspecified. Zero it so 0-weight * garbage (possibly NaN/Inf) cannot
            # poison the MXU accumulation. Cost is paid on the last tile only.
            h_dim = h_ref.shape[-1]
            rows = jax.lax.broadcasted_iota(jnp.int32, (tok_tile, h_dim), 0)
            h = jnp.where(rows < rem, h_ref[0], 0)
            acc_ref[...] += jnp.dot(w_ref[0], h,
                                    preferred_element_type=jnp.float32)

    @pl.when(k == nk - 1)
    def _finalize():
        out_ref[0] = acc_ref[...].astype(out_ref.dtype)


def mlp_kernel(x_ref, w1_ref, b1_ref, w2_ref, b2_ref, out_ref):
    """linear_1 -> GELU(tanh approx) -> dropout(identity, eval) -> linear_out, over all B rows."""
    x = x_ref[...]                                                   # (B, H) f32
    fc1 = jnp.dot(x, w1_ref[...], preferred_element_type=jnp.float32) + b1_ref[...]
    c = 0.7978845608028654  # sqrt(2/pi)
    act = 0.5 * fc1 * (1.0 + jnp.tanh(c * (fc1 + 0.044715 * fc1 * fc1 * fc1)))
    out = jnp.dot(act, w2_ref[...], preferred_element_type=jnp.float32) + b2_ref[...]
    out_ref[...] = out.astype(out_ref.dtype)                         # (B, O_pad) lane-dense


def model_sent_avg(hidden, mask, len_sents, sent_num, w1, b1, w2, b2, *, tok_tile=2048):
    """hidden: (B,S,T,H); mask: (B,S,T); len_sents: (B,S); sent_num: (B,1);
    w1: (H,H2)=linear_1.weight.T; b1: (1,H2); w2: (H2,O)=linear_out.weight.T; b2: (1,O)."""
    B, S, T, H = hidden.shape
    H2 = w1.shape[1]
    O = w2.shape[1]
    N = S * T

    # tok_tile: multiple of 128 (lane-dense weight block, bf16-friendly sublane count),
    # clamped to the token count rounded up to 128.
    tok_tile = min(_round_up(max(tok_tile, 128), 128), _round_up(N, 128))
    K = pl.cdiv(N, tok_tile)
    Np = K * tok_tile

    # Fused per-token pooling weight (tiny): mask / (len_sents + 1e-9) / sent_num.
    # Stored lane-dense as (B, 1, Np); zero-padded tail so padded tokens contribute nothing.
    wtok = (mask.astype(jnp.float32)
            / (len_sents.astype(jnp.float32) + 1e-9)[:, :, None]
            / sent_num.astype(jnp.float32)[:, :, None]).reshape(B, N)
    if Np != N:
        wtok = jnp.pad(wtok, ((0, 0), (0, Np - N)))
    wtok = wtok.reshape(B, 1, Np)

    # The big stream: reshape only (free), no dtype cast, no padding copy.
    hid = hidden.reshape(B, N, H)

    # Scoped-VMEM budget: double-buffered hidden tile + margin (v5e default is only 16 MiB).
    hid_tile_bytes = 2 * tok_tile * H * hid.dtype.itemsize
    vmem_limit = int(max(min(hid_tile_bytes + (8 << 20), 64 << 20), 32 << 20))

    pooled = pl.pallas_call(
        functools.partial(pooling_kernel, n_tokens=N, tok_tile=tok_tile),
        out_shape=jax.ShapeDtypeStruct((B, 1, H), jnp.float32),
        grid_spec=pltpu.PrefetchScalarGridSpec(
            num_scalar_prefetch=0,
            grid=(B, K),                                   # batch outer (parallel), token reduction inner
            in_specs=[
                pl.BlockSpec((1, 1, tok_tile), lambda b, k: (b, 0, k)),   # lane-dense fused weights
                pl.BlockSpec((1, tok_tile, H), lambda b, k: (b, k, 0)),   # hidden stream (native dtype)
            ],
            out_specs=pl.BlockSpec((1, 1, H), lambda b, k: (b, 0, 0)),
            scratch_shapes=[pltpu.VMEM((1, H), jnp.float32)],             # pooled-doc accumulator
        ),
        compiler_params=pltpu.CompilerParams(
            dimension_semantics=("parallel", "arbitrary"),
            vmem_limit_bytes=vmem_limit),
    )(wtok, hid)

    # MLP as a separate tiny kernel over all B rows (weights not held across the streaming grid).
    O_pad = _round_up(O, 128)
    w2p = jnp.pad(w2, ((0, 0), (0, O_pad - O))) if O_pad != O else w2
    b2p = jnp.pad(b2, ((0, 0), (0, O_pad - O))) if O_pad != O else b2
    pooled2d = pooled.reshape(B, H)

    out = pl.pallas_call(
        mlp_kernel,
        out_shape=jax.ShapeDtypeStruct((B, O_pad), jnp.float32),
        grid_spec=pltpu.PrefetchScalarGridSpec(
            num_scalar_prefetch=0,
            grid=(1,),
            in_specs=[
                pl.BlockSpec((B, H), lambda i: (0, 0)),
                pl.BlockSpec((H, H2), lambda i: (0, 0)),
                pl.BlockSpec((1, H2), lambda i: (0, 0)),
                pl.BlockSpec((H2, O_pad), lambda i: (0, 0)),
                pl.BlockSpec((1, O_pad), lambda i: (0, 0)),
            ],
            out_specs=pl.BlockSpec((B, O_pad), lambda i: (0, 0)),
        ),
    )(pooled2d, w1, b1, w2p, b2p)

    return out[:, :O]


def ref_forward(hidden, mask, len_sents, sent_num, w1, b1, w2, b2):
    h = hidden.astype(jnp.float32)
    masked = h * mask[..., None]
    sent_avg = masked.sum(axis=2) / (len_sents + 1e-9)[..., None]
    ilc = sent_avg.sum(axis=1) / sent_num
    hp = jax.lax.Precision.HIGHEST
    fc1 = jnp.dot(ilc, w1, precision=hp) + b1
    c = 0.7978845608028654
    act = 0.5 * fc1 * (1.0 + jnp.tanh(c * (fc1 + 0.044715 * fc1 ** 3)))
    return jnp.dot(act, w2, precision=hp) + b2


if __name__ == "__main__":
    B, S, T = 2, 5, 40                 # batch, sentences, tokens per sentence
    H = 768                            # encoder_out_size (hard-coded in module)
    H2 = H // 2                        # linear_1 output size
    O = 16                             # output_size

    key = jax.random.PRNGKey(0)
    k_h, k_w1, k_b1, k_w2, k_b2 = jax.random.split(key, 5)

    # Synthetic encoder output (stands in for encoder(...)['last_hidden_state']), f32 stream.
    hidden = jax.random.normal(k_h, (B, S, T, H), jnp.float32)

    # Prefix attention masks; second batch element has only 3 valid sentences.
    tok_valid = jnp.array([[40, 23, 17, 9, 5],
                           [31, 40, 12, 0, 0]], jnp.int32)
    mask = (jnp.arange(T)[None, None, :] < tok_valid[:, :, None]).astype(jnp.float32)
    len_sents = mask.sum(axis=2)                           # (B, S)
    sent_num = jnp.array([[5.0], [3.0]], jnp.float32)      # (B, 1)

    # Deterministic parameter init (xavier_uniform weights, PyTorch-style bias init).
    bound_w1 = float(np.sqrt(6.0 / (H + H2)))
    bound_w2 = float(np.sqrt(6.0 / (H2 + O)))
    w1 = jax.random.uniform(k_w1, (H, H2), jnp.float32, -bound_w1, bound_w1)   # linear_1.weight.T
    b1 = jax.random.uniform(k_b1, (1, H2), jnp.float32,
                            -1.0 / np.sqrt(H), 1.0 / np.sqrt(H))
    w2 = jax.random.uniform(k_w2, (H2, O), jnp.float32, -bound_w2, bound_w2)   # linear_out.weight.T
    b2 = jax.random.uniform(k_b2, (1, O), jnp.float32,
                            -1.0 / np.sqrt(H2), 1.0 / np.sqrt(H2))

    # Small tok_tile (multiple of 128) so the toy shapes exercise multi-step accumulation
    # AND the in-kernel masked remainder tile (N = 200 -> K = 2, rem = 72).
    out = model_sent_avg(hidden, mask, len_sents, sent_num, w1, b1, w2, b2, tok_tile=128)
    out = jax.block_until_ready(out)

    ref = ref_forward(hidden, mask, len_sents, sent_num, w1, b1, w2, b2)
    np.testing.assert_allclose(np.asarray(out), np.asarray(ref), rtol=2e-4, atol=2e-4)

    print("KERNEL_OK")
</pallas_src>

<mosaic_0001>
module attributes {stable_mosaic.version = 11 : i64} {
  func.func @pooling_kernel(%arg0: i32, %arg1: i32, %arg2: memref<1x1x128xf32, #tpu.memory_space<vmem>>, %arg3: memref<1x128x768xf32, #tpu.memory_space<vmem>>, %arg4: memref<1x1x768xf32, #tpu.memory_space<vmem>>, %arg5: memref<1x768xf32, #tpu.memory_space<vmem>>) attributes {dimension_semantics = [#tpu.dimension_semantics<parallel>, #tpu.dimension_semantics<arbitrary>], iteration_bounds = array<i64: 2, 2>, scalar_prefetch = 0 : i64, scratch_operands = 1 : i64, tpu.core_type = #tpu.core_type<tc>, window_params = [{transform_indices = @transform_0, window_bounds = array<i64: 1, 1, 128>}, {transform_indices = @transform_1, window_bounds = array<i64: 1, 128, 768>}, {transform_indices = @transform_2, window_bounds = array<i64: 1, 1, 768>}]} {
    %c0_i32 = arith.constant 0 : i32
    %0 = arith.cmpi eq, %arg1, %c0_i32 : i32
    %1 = arith.extui %0 : i1 to i32
    %c0_i32_0 = arith.constant 0 : i32
    %2 = arith.cmpi ne, %1, %c0_i32_0 : i32
    scf.if %2 {
      %cst = arith.constant 0.000000e+00 : f32
      %12 = vector.broadcast %cst : f32 to vector<1x768xf32>
      %c0 = arith.constant 0 : index
      %c0_6 = arith.constant 0 : index
      %13 = vector.load %arg5[%c0, %c0_6] : memref<1x768xf32, #tpu.memory_space<vmem>>, vector<1x768xf32>
      tpu.vector_store %arg5[%c0, %c0_6], %12 {strides = array<i32>} : memref<1x768xf32, #tpu.memory_space<vmem>>, vector<1x768xf32>,
    } else {
    }
    %c1_i32 = arith.constant 1 : i32
    %3 = arith.cmpi slt, %arg1, %c1_i32 : i32
    %4 = arith.extui %3 : i1 to i32
    %c0_i32_1 = arith.constant 0 : i32
    %5 = arith.cmpi ne, %4, %c0_i32_1 : i32
    scf.if %5 {
      %c0 = arith.constant 0 : index
      %c0_6 = arith.constant 0 : index
      %12 = vector.load %arg5[%c0, %c0_6] : memref<1x768xf32, #tpu.memory_space<vmem>>, vector<1x768xf32>
      %c0_7 = arith.constant 0 : index
      %c0_8 = arith.constant 0 : index
      %c0_9 = arith.constant 0 : index
      %13 = vector.load %arg2[%c0_7, %c0_8, %c0_9] : memref<1x1x128xf32, #tpu.memory_space<vmem>>, vector<1x1x128xf32>
      %14 = vector.shape_cast %13 : vector<1x1x128xf32> to vector<1x128xf32>
      %c0_10 = arith.constant 0 : index
      %c0_11 = arith.constant 0 : index
      %c0_12 = arith.constant 0 : index
      %15 = vector.load %arg3[%c0_10, %c0_11, %c0_12] : memref<1x128x768xf32, #tpu.memory_space<vmem>>, vector<1x128x768xf32>
      %16 = vector.shape_cast %15 : vector<1x128x768xf32> to vector<128x768xf32>
      %cst = arith.constant dense<0.000000e+00> : vector<1x768xf32>
      %17 = tpu.matmul %14, %16, %cst {dimension_numbers = #tpu.dot_dimension_numbers<[1], [0], [0], [1], [0, 0, 1, 1], [], []>} : vector<1x128xf32>, vector<128x768xf32>, vector<1x768xf32> -> vector<1x768xf32>
      %18 = arith.addf %12, %17 : vector<1x768xf32>
      %c0_13 = arith.constant 0 : index
      %c0_14 = arith.constant 0 : index
      %19 = vector.load %arg5[%c0_13, %c0_14] : memref<1x768xf32, #tpu.memory_space<vmem>>, vector<1x768xf32>
      tpu.vector_store %arg5[%c0_13, %c0_14], %18 {strides = array<i32>} : memref<1x768xf32, #tpu.memory_space<vmem>>, vector<1x768xf32>,
    } else {
    }
    %c1_i32_2 = arith.constant 1 : i32
    %6 = arith.cmpi eq, %arg1, %c1_i32_2 : i32
    %7 = arith.extui %6 : i1 to i32
    %c0_i32_3 = arith.constant 0 : i32
    %8 = arith.cmpi ne, %7, %c0_i32_3 : i32
    scf.if %8 {
      %12 = tpu.iota {dimensions = array<i32: 0>} : vector<128x768xi32>
      %c72_i32 = arith.constant 72 : i32
      %13 = vector.broadcast %c72_i32 : i32 to vector<128x768xi32>
      %14 = arith.cmpi slt, %12, %13 : vector<128x768xi32>
      %c0 = arith.constant 0 : index
      %c0_6 = arith.constant 0 : index
      %c0_7 = arith.constant 0 : index
      %15 = vector.load %arg3[%c0, %c0_6, %c0_7] : memref<1x128x768xf32, #tpu.memory_space<vmem>>, vector<1x128x768xf32>
      %16 = vector.shape_cast %15 : vector<1x128x768xf32> to vector<128x768xf32>
      %c0_i32_8 = arith.constant 0 : i32
      %17 = arith.sitofp %c0_i32_8 : i32 to f32
      %18 = vector.broadcast %17 : f32 to vector<128x768xf32>
      %19 = arith.select %14, %16, %18 : vector<128x768xi1>, vector<128x768xf32>
      %c0_9 = arith.constant 0 : index
      %c0_10 = arith.constant 0 : index
      %20 = vector.load %arg5[%c0_9, %c0_10] : memref<1x768xf32, #tpu.memory_space<vmem>>, vector<1x768xf32>
      %c0_11 = arith.constant 0 : index
      %c0_12 = arith.constant 0 : index
      %c0_13 = arith.constant 0 : index
      %21 = vector.load %arg2[%c0_11, %c0_12, %c0_13] : memref<1x1x128xf32, #tpu.memory_space<vmem>>, vector<1x1x128xf32>
      %22 = vector.shape_cast %21 : vector<1x1x128xf32> to vector<1x128xf32>
      %cst = arith.constant dense<0.000000e+00> : vector<1x768xf32>
      %23 = tpu.matmul %22, %19, %cst {dimension_numbers = #tpu.dot_dimension_numbers<[1], [0], [0], [1], [0, 0, 1, 1], [], []>} : vector<1x128xf32>, vector<128x768xf32>, vector<1x768xf32> -> vector<1x768xf32>
      %24 = arith.addf %20, %23 : vector<1x768xf32>
      %c0_14 = arith.constant 0 : index
      %c0_15 = arith.constant 0 : index
      %25 = vector.load %arg5[%c0_14, %c0_15] : memref<1x768xf32, #tpu.memory_space<vmem>>, vector<1x768xf32>
      tpu.vector_store %arg5[%c0_14, %c0_15], %24 {strides = array<i32>} : memref<1x768xf32, #tpu.memory_space<vmem>>, vector<1x768xf32>,
    } else {
    }
    %c1_i32_4 = arith.constant 1 : i32
    %9 = arith.cmpi eq, %arg1, %c1_i32_4 : i32
    %10 = arith.extui %9 : i1 to i32
    %c0_i32_5 = arith.constant 0 : i32
    %11 = arith.cmpi ne, %10, %c0_i32_5 : i32
    scf.if %11 {
      %c0 = arith.constant 0 : index
      %c0_6 = arith.constant 0 : index
      %12 = vector.load %arg5[%c0, %c0_6] : memref<1x768xf32, #tpu.memory_space<vmem>>, vector<1x768xf32>
      %c0_7 = arith.constant 0 : index
      %c0_8 = arith.constant 0 : index
      %c0_9 = arith.constant 0 : index
      %13 = vector.load %arg4[%c0_7, %c0_8, %c0_9] : memref<1x1x768xf32, #tpu.memory_space<vmem>>, vector<1x1x768xf32>
      %14 = vector.shape_cast %13 : vector<1x1x768xf32> to vector<1x768xf32>
      %15 = vector.shape_cast %12 : vector<1x768xf32> to vector<1x1x768xf32>
      tpu.vector_store %arg4[%c0_7, %c0_8, %c0_9], %15 {strides = array<i32>} : memref<1x1x768xf32, #tpu.memory_space<vmem>>, vector<1x1x768xf32>,
    } else {
    }
    return
  }
  func.func @transform_0(%arg0: i32, %arg1: i32) -> (i32, i32, i32) {
    %c0_i32 = arith.constant 0 : i32
    %c0_i32_0 = arith.constant 0 : i32
    return %arg0, %c0_i32, %arg1 : i32, i32, i32
  }
  func.func @transform_1(%arg0: i32, %arg1: i32) -> (i32, i32, i32) {
    %c0_i32 = arith.constant 0 : i32
    %c0_i32_0 = arith.constant 0 : i32
    return %arg0, %arg1, %c0_i32 : i32, i32, i32
  }
  func.func @transform_2(%arg0: i32, %arg1: i32) -> (i32, i32, i32) {
    %c0_i32 = arith.constant 0 : i32
    %c0_i32_0 = arith.constant 0 : i32
    %c0_i32_1 = arith.constant 0 : i32
    return %arg0, %c0_i32, %c0_i32_0 : i32, i32, i32
  }
}

</mosaic_0001>

<bundles_post_ra>
// kernel: tpu_custom_call.1
= control target key start
LH: loop header
LB: loop body
LE: loop exit
PB: predicated region body
PF: predicated region fallthrough
CT: control target
= control target key end

     0   :  { %7 = vsyncpa [#allocation4], 0  ;;  %s1961_s0 = inlined_call_operand.hbm [shape: f32[2,1,256], index: 0, kind: input, shape index: {}]   ;;  %s1962_s1 = inlined_call_operand.hbm [shape: f32[2,200,768], index: 1, kind: input, shape index: {}]   ;;  %s1963_s2 = inlined_call_operand.hbm [shape: f32[2,1,768], index: 2, kind: output, shape index: {}]  }
   0x1   :  { %9 = vsyncpa [#allocation4 + $0x1], 0 }
   0x2   :  { %10 = vsyncpa [#allocation7], 0 }
   0x3   :  { %12 = vsyncpa [#allocation7 + $0x1], 0 }
   0x4   :  { %13 = vsyncpa [#allocation5], 0 }
   0x5   :  { %15 = vsyncpa [#allocation5 + $0x1], 0  ;;  %s1561_s9 = smov 0   ;;  %s1563_s10 = smov 0  }
   0x6   :  { %s1565_s11 = smov 0   ;;  %s1567_s12 = smov 0  }
   0x7   :  { %s1569_s13 = smov 0   ;;  %s1571_s14 = smov 0  }
   0x8   :  { %s1573_s15 = smov 0   ;;  %s1575_s16 = smov 0  }
   0x9   :  { %s1577_s17 = smov 0   ;;  %s1579_s18 = smov 0  }
   0xa   :  { %s1581_s19 = smov 0  }
   0xb LB: > { %1967 = sst [smem:[#allocation12_spill]] %s1514_s14  ;;  %s1227_s20 = sadd.s32 4294967295, %s1534_s19   ;;  %s1534_s19 = sphi %s1581_s19, %s21_s19   ;;  %s1530_s18 = sphi %s1579_s18, %s1987_s18   ;;  %s1526_s17 = sphi %s1577_s17, %s1986_s17   ;;  %s1522_s16 = sphi %s1575_s16, %s1985_s16   ;;  %s1518_s15 = sphi %s1573_s15, %s1984_s15   ;;  %s1514_s14 = sphi %s1571_s14, %s1976_s14   ;;  %s1510_s13 = sphi %s1569_s13, %s1983_s13   ;;  %s1506_s12 = sphi %s1567_s12, %s1982_s12   ;;  %s1502_s11 = sphi %s1565_s11, %s1981_s11   ;;  %s1498_s10 = sphi %s1563_s10, %s1980_s10   ;;  %s1494_s9 = sphi %s1561_s9, %s1979_s9  }
   0xc   : > { %s1228_s21 = sadd.s32 4294967294, %s1534_s19   ;;  %s30_s22 = sadd.s32 1, %s1526_s17 }
   0xd   : > { %s33_s23 = sadd.s32 1, %s1530_s18  ;;  %p31_p0 = scmp.ge.s32.totalorder %s30_s22, 2 }
   0xe   : > { %s42_s24 = sadd.s32 1, %s1514_s14  ;;  %p49_p1 = scmp.ne.s32.totalorder %s1514_s14, %s1510_s13 }
   0xf   : > { %p50_p2 = scmp.eq.s32.totalorder %s1534_s19, 0  ;;  %s1989_s22 = smov (%p31_p0, %s30_s22), 0 }
  0x10   : > { %1968 = sst [smem:[#allocation13_spill]] %s1989_s22  ;;  %s1991_s23 = smov (!%p31_p0, %s33_s23), %s1530_s18 }
  0x11   : > { %s38_s25 = ssub.s32 %s1526_s17, %s1989_s22  ;;  %p1627_p3 = por %p50_p2, %p49_p1 }
  0x12   : > { %p35_p4 = scmp.ge.s32.totalorder %s1991_s23, 2  ;;  %p55_p5 = scmp.ne.s32.totalorder %s1510_s13, %s1506_s12 }
  0x13   : > { %p56_p6 = scmp.eq.s32.totalorder %s1227_s20, 0  ;;  %s96_s27 = sadd.s32 1, %s1502_s11 }
  0x14   : > { %s1993_s23 = smov (%p35_p4, %s1991_s23), 0  ;;  %p106_p8 = scmp.ne.s32.totalorder %s1502_s11, %s1498_s10 }
  0x15   : > { %1970 = sst [smem:[#allocation14_spill]] %s1993_s23  ;;  %p1635_p7 = por %p56_p6, %p55_p5 }
  0x16   : > { %s37_s29 = ssub.s32 %s1530_s18, %s1993_s23  ;;  %p107_p9 = scmp.eq.s32.totalorder %s1227_s20, 3 }
  0x17   : > { %s39_s30 = sor.u32 %s38_s25, %s37_s29  ;;  %p94_p10 = scmp.eq.s32.totalorder %s37_s29, 0 }
  0x18   : > { %p40_p11 = scmp.eq.s32.totalorder %s39_s30, 0  ;;  %p1643_p12 = por %p107_p9, %p106_p8 }
  0x19   : > { %s1648_s4 = scalar_select %p94_p10, %s1502_s11, %s96_s27  }
  0x1a   : > { %s1651_s5 = scalar_select %p40_p11, %s1514_s14, %s42_s24  }
  0x1b   : > { %p112_p13 = scmp.ne.s32.totalorder %s1498_s10, %s1494_s9  ;;  %p113_p0 = scmp.eq.s32.totalorder %s1228_s21, 3 }
  0x1c   : > { %1973 = sst [smem:[#allocation15_spill]] %s1651_s5  ;;  %p1230_p2 = scmp.ge.s32.totalorder %s1534_s19, 4 }
  0x1d   : > { %p1655_p1 = por %p113_p0, %p112_p13  ;;  %s1661_s7 = sand.u32 (!%p1230_p2), 1, %s1514_s14  }
  0x1e   : > { %129 = sbr.rel (%p1230_p2) target bundleno = 82 (0x52), region = 16  ;;  %s1231_s8 = sshll.u32 (!%p1230_p2), %s1530_s18, 1 }
  0x1f   : > { %s141_s12 = sadd.s32 (!%p1230_p2), %s1526_s17, %s1231_s8  ;;  %s136_s20 = scalar_lea.vmem (!%p1230_p2), [#allocation3], %s1661_s7 }
  0x20   : > { %s145_s24 = sshll.u32 (!%p1230_p2), %s136_s20, 4  ;;  %s1232_s21 = sshll.u32 (!%p1230_p2), %s141_s12, 4  ;;  %s146_s24 = int_to_ptr.vmem [resolvable:$true] %s145_s24 }
  0x21   : > { %s143_s29 = scalar_lea.hbm (!%p1230_p2), %s1961_s0, %s1232_s21  ;;  %s134_s30 = scalar_lea.sflag (!%p1230_p2), [#allocation4], %s1661_s7 }
  0x22   : > { %s1370_s23 = scalar_lea.vmem (!%p1230_p2), %s146_s24, 16  ;;  %s1536_s22 = smov (!%p1230_p2), [#allocation3]  }
  0x23   : > { %p1371_p4 = scmp.ne.s32.totalorder %s146_s24, %s1370_s23  ;;  %s1374_s5 = sshll.u32 %s1536_s22, 4  ;;  %s1375_s5 = int_to_ptr.vmem [resolvable:$false] %s1374_s5 }
  0x24   : > { %s1376_s14 = scalar_lea.vmem %s1375_s5, 32  ;;  %p1377_p8 = scmp.lt.s32.totalorder %s146_s24, %s1375_s5 }
  0x25   : > { %p1372_p5 = pnand %p1371_p4, %p1627_p3  ;;  %p1378_p9 = scmp.lt.s32.totalorder %s1376_s14, %s1370_s23 }
  0x27   : > { %p1373_p6 = pneg %p1372_p5  ;;  %p1379_p10 = por %p1378_p9, %p1377_p8 }
  0x29   : > { %p1380_p11 = pnand %p1379_p10, %p1373_p6 }
  0x2b   : > { %1383 = shalt.err (!%p1380_p11)
}
  0x2c   : > { %1253 = dma.hbm_to_vmem [thread:$0]  (%p1627_p3), %s143_s29, 16, %s146_s24, %s134_s30  }
  0x2d   : > { %151 = sbr.rel (!%p1627_p3) target bundleno = 82 (0x52), region = 24  ;;  %s1233_s12 = sshll.u32 (%p1627_p3), %s1526_s17, 4 }
  0x2e   : > { %s1247_s8 = smul.u32 (%p1627_p3), 768, %s1661_s7  ;;  %s158_s22 = ssub.s32 (%p1627_p3), 25, %s1233_s12 }
  0x2f   : > { %p159_p13 = scmp.lt.s32.totalorder (%p1627_p3), %s158_s22, 16  ;;  %s153_s23 = scalar_lea.sflag (%p1627_p3), [#allocation7], %s1661_s7 }
  0x30   : > { %s156_s20 = scalar_lea.vmem (%p1627_p3), [#allocation6], %s1247_s8 }
  0x32   : > { %s1995_s22 = smov (!%p159_p13, %s158_s22), 16 }
  0x33   : > { %s1678_s5 = smul.u32 768, %s1995_s22 }
  0x35   : > { %s164_s14 = ssub.s32 12288, %s1678_s5 }
  0x36   : > { %165 = vsyncadd %s153_s23, %s164_s14  ;;  %p1236_p3 = scmp.ne.s32.totalorder %s1678_s5, 0  ;;  %s1248_s26 = smul.u32 96, %s1526_s17 }
  0x37   : > { %s1249_s24 = smul.u32 150, %s1530_s18  ;;  %s173_s21 = sshll.u32 %s156_s20, 4  ;;  %s1687_s21 = int_to_ptr.vmem [resolvable:$true] %s173_s21 }
  0x38   : > { %s1388_s20 = scalar_lea.hbm %s1962_s1, 38400 }
  0x39   : > { %s169_s25 = sadd.s32 %s1249_s24, %s1248_s26 }
  0x3a   : > { %s1238_s27 = sshll.u32 %s169_s25, 7 }
  0x3b   : > { %s1692_s12 = scalar_lea.hbm %s1962_s1, %s1238_s27 }
  0x3c   : > { %s1384_s8 = scalar_lea.hbm %s1692_s12, %s1678_s5 }
  0x3d   : > { %p1385_p0 = scmp.ne.s32.totalorder %s1692_s12, %s1384_s8  ;;  %p1390_p5 = scmp.lt.s32.totalorder %s1388_s20, %s1384_s8 }
  0x3f   : > { %p1386_p2 = pnand %p1385_p0, %p1236_p3 }
  0x41   : > { %p1387_p4 = pneg %p1386_p2 }
  0x43   : > { %p1392_p6 = pnand %p1390_p5, %p1387_p4 }
  0x45   : > { %1395 = shalt.err (!%p1392_p6)
}
  0x46   : > { %s1396_s26 = scalar_lea.vmem %s1687_s21, %s1678_s5  ;;  %s1537_s24 = smov [#allocation6]  }
  0x47   : > { %p1397_p8 = scmp.ne.s32.totalorder %s1687_s21, %s1396_s26  ;;  %s1400_s25 = sshll.u32 %s1537_s24, 4  ;;  %s1401_s25 = int_to_ptr.vmem [resolvable:$false] %s1400_s25 }
  0x48   : > { %s1402_s27 = scalar_lea.vmem %s1401_s25, 24576  ;;  %p1403_p11 = scmp.lt.s32.totalorder %s1687_s21, %s1401_s25 }
  0x49   : > { %p1398_p9 = pnand %p1397_p8, %p1236_p3  ;;  %p1404_p13 = scmp.lt.s32.totalorder %s1402_s27, %s1396_s26 }
  0x4b   : > { %p1399_p10 = pneg %p1398_p9  ;;  %p1405_p0 = por %p1404_p13, %p1403_p11 }
  0x4d   : > { %p1406_p2 = pnand %p1405_p0, %p1399_p10 }
  0x4f   : > { %1409 = shalt.err (!%p1406_p2)
}
  0x50   : > { %s1538_s29 = smov 768   ;;  %s1539_s30 = smov 48  }
  0x51   : > { %179 = dma.hbm_to_vmem [thread:$0]  (%p1236_p3), %s1692_s12, %s1678_s5, %s1687_s21, %s153_s23, %s1538_s29, %s1538_s29, %s1539_s30  }
  0x52 PF: > { %p1240_p4 = scmp.ge.s32.totalorder %s1534_s19, 1  ;;  %p181_p5 = scmp.lt.s32.totalorder %s1534_s19, 5 }
  0x54   : > { %p182_p6 = pnand %p1240_p4, %p181_p5 }
  0x55   : > { %s1718_s8 = sand.u32 (!%p182_p6), 1, %s1510_s13  }
  0x56   : > { %185 = sbr.rel (%p182_p6) target bundleno = 671 (0x29f), region = 28  ;;  %s188_s22 = scalar_lea.sflag (!%p182_p6), [#allocation4], %s1718_s8 }
  0x57   : > { %s190_s14 = scalar_lea.vmem (!%p182_p6), [#allocation3], %s1718_s8 }
  0x5b   : > { %1481 = dma.done.wait (%p1635_p7), %s188_s22, 16  }
  0x5c   : > { %1483 = vsyncadd (%p1635_p7), %s188_s22, 4294967280  ;;  %s1250_s7 = smul.u32 768, %s1718_s8  ;;  %s196_s5 = scalar_lea.sflag [#allocation7], %s1718_s8 }
  0x5e   : > { %s1728_s23 = scalar_lea.vmem [#allocation6], %s1250_s7 }
  0x5f   : > { %1485 = dma.done.wait (%p1635_p7), %s196_s5, 12288  }
  0x60   : > { %1487 = vsyncadd (%p1635_p7), %s196_s5, 4294955008  ;;  %s221_s21 = sand.u32 1, %s1498_s10   ;;  %p1241_p3 = scmp.ne.s32.totalorder %s1518_s15, 0 }
  0x61   : > { %s1737_s12 = smul.u32 6, %s221_s21 }
  0x62   : > { %233 = sbr.rel (%p1241_p3) target bundleno = 107 (0x6b), region = 40 }
  0x63   : > { %s223_s20 = scalar_lea.vmem [#allocation8], %s1737_s12 }
  0x67   : > { %v234_v0 = vlaneseq  ;;  %v1540_v1 = vmov 0.0  }
  0x69   : > { %vm236_vm0 = vcmp.lt.s32.totalorder %v234_v0, 768 }
  0x6a   : > { %238 = vst.msk [vmem:[#allocation2] sm:$0x3f] %vm236_vm0, %v1540_v1 }
  0x6b PF: > { %p1242_p8 = scmp.ge.s32.totalorder %s1518_s15, 1 }
  0x6d   : > { %242 = sbr.rel (%p1242_p8) target bundleno = 387 (0x183), region = 44 }
  0x72   : > { %v336_v2 = vld [vmem:[%s1728_s23 + $0x2d8] sm:$0xff]  ;;  %v338_v3 = vld [vmem:[%s1728_s23 + $0x2e8] sm:$0xff]  ;;  %v335_v4 = vld [vmem:[%s1728_s23 + $0x2d0] sm:$0xff] }
  0x73   : > { %341 = vmatprep.subr.mxu0 %v336_v2  ;;  %412 = vmatprep.subr.mxu1 %v338_v3  ;;  %v337_v5 = vld [vmem:[%s1728_s23 + $0x2e0] sm:$0xff]  ;;  %v330_v6 = vld [vmem:[%s1728_s23 + $0x2a8] sm:$0xff]  ;;  %v332_v7 = vld [vmem:[%s1728_s23 + $0x2b8] sm:$0xff]  ;;  %v1541_v3 = vmov 0.0  }
  0x74   : > { %342 = vmatpush1.msra.mxu0 %v335_v4  ;;  %413 = vmatpush1.msra.mxu1 %v337_v5  ;;  %v329_v8 = vld [vmem:[%s1728_s23 + $0x2a0] sm:$0xff]  ;;  %v331_v9 = vld [vmem:[%s1728_s23 + $0x2b0] sm:$0xff]  ;;  %v324_v10 = vld [vmem:[%s1728_s23 + $0x278] sm:$0xff] }
  0x75   : > { %343 = vmatprep.subr.mxu0 %v330_v6  ;;  %414 = vmatprep.subr.mxu1 %v332_v7  ;;  %v326_v11 = vld [vmem:[%s1728_s23 + $0x288] sm:$0xff]  ;;  %v323_v12 = vld [vmem:[%s1728_s23 + $0x270] sm:$0xff]  ;;  %v325_v13 = vld [vmem:[%s1728_s23 + $0x280] sm:$0xff] }
  0x76   : > { %344 = vmatpush1.msra.mxu0 %v329_v8  ;;  %415 = vmatpush1.msra.mxu1 %v331_v9  ;;  %v318_v14 = vld [vmem:[%s1728_s23 + $0x248] sm:$0xff]  ;;  %v320_v15 = vld [vmem:[%s1728_s23 + $0x258] sm:$0xff]  ;;  %v317_v16 = vld [vmem:[%s1728_s23 + $0x240] sm:$0xff] }
  0x77   : > { %345 = vmatprep.subr.mxu0 %v324_v10  ;;  %416 = vmatprep.subr.mxu1 %v326_v11  ;;  %v319_v17 = vld [vmem:[%s1728_s23 + $0x250] sm:$0xff]  ;;  %v312_v18 = vld [vmem:[%s1728_s23 + $0x218] sm:$0xff]  ;;  %v314_v19 = vld [vmem:[%s1728_s23 + $0x228] sm:$0xff] }
  0x78   : > { %346 = vmatpush1.msra.mxu0 %v323_v12  ;;  %417 = vmatpush1.msra.mxu1 %v325_v13  ;;  %v311_v20 = vld [vmem:[%s1728_s23 + $0x210] sm:$0xff]  ;;  %v313_v21 = vld [vmem:[%s1728_s23 + $0x220] sm:$0xff]  ;;  %v306_v22 = vld [vmem:[%s1728_s23 + $0x1e8] sm:$0xff] }
  0x79   : > { %347 = vmatprep.subr.mxu0 %v318_v14  ;;  %418 = vmatprep.subr.mxu1 %v320_v15  ;;  %v308_v23 = vld [vmem:[%s1728_s23 + $0x1f8] sm:$0xff]  ;;  %v305_v24 = vld [vmem:[%s1728_s23 + $0x1e0] sm:$0xff]  ;;  %v307_v25 = vld [vmem:[%s1728_s23 + $0x1f0] sm:$0xff] }
  0x7a   : > { %348 = vmatpush1.msra.mxu0 %v317_v16  ;;  %419 = vmatpush1.msra.mxu1 %v319_v17  ;;  %v300_v26 = vld [vmem:[%s1728_s23 + $0x1b8] sm:$0xff]  ;;  %v302_v27 = vld [vmem:[%s1728_s23 + $0x1c8] sm:$0xff]  ;;  %v299_v28 = vld [vmem:[%s1728_s23 + $0x1b0] sm:$0xff] }
  0x7b   : > { %349 = vmatprep.subr.mxu0 %v312_v18  ;;  %420 = vmatprep.subr.mxu1 %v314_v19  ;;  %v301_v29 = vld [vmem:[%s1728_s23 + $0x1c0] sm:$0xff]  ;;  %v294_v30 = vld [vmem:[%s1728_s23 + $0x188] sm:$0xff]  ;;  %v296_v31 = vld [vmem:[%s1728_s23 + $0x198] sm:$0xff] }
  0x7c   : > { %350 = vmatpush1.msra.mxu0 %v311_v20  ;;  %421 = vmatpush1.msra.mxu1 %v313_v21  ;;  %v293_v32 = vld [vmem:[%s1728_s23 + $0x180] sm:$0xff]  ;;  %v295_v33 = vld [vmem:[%s1728_s23 + $0x190] sm:$0xff]  ;;  %v288_v34 = vld [vmem:[%s1728_s23 + $0x158] sm:$0xff] }
  0x7d   : > { %351 = vmatprep.subr.mxu0 %v306_v22  ;;  %422 = vmatprep.subr.mxu1 %v308_v23  ;;  %v290_v35 = vld [vmem:[%s1728_s23 + $0x168] sm:$0xff]  ;;  %v287_v36 = vld [vmem:[%s1728_s23 + $0x150] sm:$0xff]  ;;  %v289_v37 = vld [vmem:[%s1728_s23 + $0x160] sm:$0xff] }
  0x7e   : > { %352 = vmatpush1.msra.mxu0 %v305_v24  ;;  %423 = vmatpush1.msra.mxu1 %v307_v25  ;;  %v282_v38 = vld [vmem:[%s1728_s23 + $0x128] sm:$0xff]  ;;  %v284_v39 = vld [vmem:[%s1728_s23 + $0x138] sm:$0xff]  ;;  %v281_v40 = vld [vmem:[%s1728_s23 + $0x120] sm:$0xff] }
  0x7f   : > { %353 = vmatprep.subr.mxu0 %v300_v26  ;;  %424 = vmatprep.subr.mxu1 %v302_v27  ;;  %v283_v41 = vld [vmem:[%s1728_s23 + $0x130] sm:$0xff]  ;;  %v276_v42 = vld [vmem:[%s1728_s23 + $0xf8] sm:$0xff]  ;;  %v278_v43 = vld [vmem:[%s1728_s23 + $0x108] sm:$0xff] }
  0x80   : > { %354 = vmatpush1.msra.mxu0 %v299_v28  ;;  %425 = vmatpush1.msra.mxu1 %v301_v29  ;;  %v275_v44 = vld [vmem:[%s1728_s23 + $0xf0] sm:$0xff]  ;;  %v277_v45 = vld [vmem:[%s1728_s23 + $0x100] sm:$0xff]  ;;  %v270_v46 = vld [vmem:[%s1728_s23 + $0xc8] sm:$0xff] }
  0x81   : > { %355 = vmatprep.subr.mxu0 %v294_v30  ;;  %426 = vmatprep.subr.mxu1 %v296_v31  ;;  %v272_v47 = vld [vmem:[%s1728_s23 + $0xd8] sm:$0xff]  ;;  %v269_v48 = vld [vmem:[%s1728_s23 + $0xc0] sm:$0xff]  ;;  %v271_v49 = vld [vmem:[%s1728_s23 + $0xd0] sm:$0xff] }
  0x82   : > { %356 = vmatpush1.msra.mxu0 %v293_v32  ;;  %427 = vmatpush1.msra.mxu1 %v295_v33  ;;  %v264_v50 = vld [vmem:[%s1728_s23 + $0x98] sm:$0xff]  ;;  %v266_v51 = vld [vmem:[%s1728_s23 + $0xa8] sm:$0xff]  ;;  %v263_v52 = vld [vmem:[%s1728_s23 + $0x90] sm:$0xff] }
  0x83   : > { %357 = vmatprep.subr.mxu0 %v288_v34  ;;  %428 = vmatprep.subr.mxu1 %v290_v35  ;;  %v265_v53 = vld [vmem:[%s1728_s23 + $0xa0] sm:$0xff]  ;;  %v258_v54 = vld [vmem:[%s1728_s23 + $0x68] sm:$0xff]  ;;  %v260_v55 = vld [vmem:[%s1728_s23 + $0x78] sm:$0xff] }
  0x84   : > { %358 = vmatpush1.msra.mxu0 %v287_v36  ;;  %429 = vmatpush1.msra.mxu1 %v289_v37  ;;  %v257_v56 = vld [vmem:[%s1728_s23 + $0x60] sm:$0xff]  ;;  %v259_v57 = vld [vmem:[%s1728_s23 + $0x70] sm:$0xff]  ;;  %v252_v58 = vld [vmem:[%s1728_s23 + $0x38] sm:$0xff]  ;;  %v1542_v36 = vmov 1966171168  }
  0x85   : > { %359 = vmatprep.subr.mxu0 %v282_v38  ;;  %430 = vmatprep.subr.mxu1 %v284_v39  ;;  %v254_v59 = vld [vmem:[%s1728_s23 + $0x48] sm:$0xff]  ;;  %v251_v60 = vld [vmem:[%s1728_s23 + $0x30] sm:$0xff]  ;;  %v253_v61 = vld [vmem:[%s1728_s23 + $0x40] sm:$0xff]  ;;  %v564_v37 = vunpack.c.l.s4 %v1542_v36  ;;  %v566_v38 = vlaneseq }
  0x86   : > { %360 = vmatpush1.msra.mxu0 %v281_v40  ;;  %431 = vmatpush1.msra.mxu1 %v283_v41  ;;  %v246_v62 = vld [vmem:[%s1728_s23 + $0x8] sm:$0xff]  ;;  %v248_v63 = vld [vmem:[%s1728_s23 + $0x18] sm:$0xff]  ;;  %v245_v0 = vld [vmem:[%s1728_s23] sm:$0xff] }
  0x87   : > { %361 = vmatprep.subr.mxu0 %v276_v42  ;;  %432 = vmatprep.subr.mxu1 %v278_v43  ;;  %v247_v1 = vld [vmem:[%s1728_s23 + $0x10] sm:$0xff]  ;;  %v1808_v2 = vld [vmem:[%s190_s14] sm:$0x1]  ;;  %v334_v6 = vld [vmem:[%s1728_s23 + $0x2c8] sm:$0xff]  ;;  %v565_v41 = vunpack.c.0.s8 %v564_v37  ;;  %v567_v42 = vshrl.u32 %v566_v38, 7  ;;  %vm604_vm1 = vcmp.lt.s32.totalorder %v566_v38, 768 }
  0x88   : > { %362 = vmatpush1.msra.mxu0 %v275_v44  ;;  %433 = vmatpush1.msra.mxu1 %v277_v45  ;;  %v340_v4 = vld [vmem:[%s1728_s23 + $0x2f8] sm:$0xff]  ;;  %v339_v5 = vld [vmem:[%s1728_s23 + $0x2f0] sm:$0xff]  ;;  %v333_v7 = vld [vmem:[%s1728_s23 + $0x2c0] sm:$0xff] }
  0x89   : > { %363 = vmatprep.subr.mxu0 %v270_v46  ;;  %434 = vmatprep.subr.mxu1 %v272_v47  ;;  %v328_v8 = vld [vmem:[%s1728_s23 + $0x298] sm:$0xff]  ;;  %v327_v9 = vld [vmem:[%s1728_s23 + $0x290] sm:$0xff]  ;;  %v322_v10 = vld [vmem:[%s1728_s23 + $0x268] sm:$0xff]  ;;  %v568_v46 = vsub.s32 %v565_v41, %v567_v42 }
  0x8a   : > { %364 = vmatpush1.msra.mxu0 %v269_v48  ;;  %435 = vmatpush1.msra.mxu1 %v271_v49  ;;  %v321_v11 = vld [vmem:[%s1728_s23 + $0x260] sm:$0xff]  ;;  %v316_v12 = vld [vmem:[%s1728_s23 + $0x238] sm:$0xff]  ;;  %v315_v13 = vld [vmem:[%s1728_s23 + $0x230] sm:$0xff] }
  0x8b   : > { %365 = vmatprep.subr.mxu0 %v264_v50  ;;  %436 = vmatprep.subr.mxu1 %v266_v51  ;;  %v310_v14 = vld [vmem:[%s1728_s23 + $0x208] sm:$0xff]  ;;  %v309_v15 = vld [vmem:[%s1728_s23 + $0x200] sm:$0xff]  ;;  %v304_v16 = vld [vmem:[%s1728_s23 + $0x1d8] sm:$0xff] }
  0x8c   : > { %366 = vmatpush1.msra.mxu0 %v263_v52  ;;  %437 = vmatpush1.msra.mxu1 %v265_v53  ;;  %v303_v17 = vld [vmem:[%s1728_s23 + $0x1d0] sm:$0xff]  ;;  %v298_v18 = vld [vmem:[%s1728_s23 + $0x1a8] sm:$0xff]  ;;  %v297_v19 = vld [vmem:[%s1728_s23 + $0x1a0] sm:$0xff] }
  0x8d   : > { %367 = vmatprep.subr.mxu0 %v258_v54  ;;  %438 = vmatprep.subr.mxu1 %v260_v55  ;;  %v292_v20 = vld [vmem:[%s1728_s23 + $0x178] sm:$0xff]  ;;  %v291_v21 = vld [vmem:[%s1728_s23 + $0x170] sm:$0xff]  ;;  %v286_v22 = vld [vmem:[%s1728_s23 + $0x148] sm:$0xff] }
  0x8e   : > { %368 = vmatpush1.msra.mxu0 %v257_v56  ;;  %439 = vmatpush1.msra.mxu1 %v259_v57  ;;  %v285_v23 = vld [vmem:[%s1728_s23 + $0x140] sm:$0xff]  ;;  %v280_v24 = vld [vmem:[%s1728_s23 + $0x118] sm:$0xff]  ;;  %v279_v25 = vld [vmem:[%s1728_s23 + $0x110] sm:$0xff] }
  0x8f   : > { %369 = vmatprep.subr.mxu0 %v252_v58  ;;  %440 = vmatprep.subr.mxu1 %v254_v59  ;;  %v274_v26 = vld [vmem:[%s1728_s23 + $0xe8] sm:$0xff]  ;;  %v273_v27 = vld [vmem:[%s1728_s23 + $0xe0] sm:$0xff]  ;;  %v268_v28 = vld [vmem:[%s1728_s23 + $0xb8] sm:$0xff] }
  0x90   : > { %370 = vmatpush1.msra.mxu0 %v251_v60  ;;  %441 = vmatpush1.msra.mxu1 %v253_v61  ;;  %v267_v29 = vld [vmem:[%s1728_s23 + $0xb0] sm:$0xff]  ;;  %v262_v30 = vld [vmem:[%s1728_s23 + $0x88] sm:$0xff]  ;;  %v261_v31 = vld [vmem:[%s1728_s23 + $0x80] sm:$0xff] }
  0x91   : > { %371 = vmatprep.subr.mxu0 %v246_v62  ;;  %442 = vmatprep.subr.mxu1 %v248_v63  ;;  %v256_v32 = vld [vmem:[%s1728_s23 + $0x58] sm:$0xff]  ;;  %v255_v33 = vld [vmem:[%s1728_s23 + $0x50] sm:$0xff]  ;;  %v250_v34 = vld [vmem:[%s1728_s23 + $0x28] sm:$0xff] }
  0x92   : > { %372 = vmatpush1.msra.mxu0 %v245_v0  ;;  %405 = vmatprep.mubr.f32.mxu0 %v1541_v3  ;;  %v249_v35 = vld [vmem:[%s1728_s23 + $0x20] sm:$0xff]  ;;  %v243_v57 = vld [vmem:[#allocation2] sm:$0x3f] }
  0x93   : > { %443 = vmatpush1.msra.mxu1 %v247_v1  ;;  %476 = vmatprep.mubr.f32.mxu1 %v1541_v3 }
  0x94   : > { %406 = vmatmul.mubr.f32.vlgmr.msra.gmra.mxu0 %v1808_v2  ;;  %477 = vmatmul.mubr.f32.vlgmr.msra.gmra.mxu1 %v1808_v2 }
  0x95   : > { %483 = vmatprep.subr.mxu0 %v340_v4  ;;  %547 = vmatprep.mubr.f32.mxu0 %v1541_v3 }
  0x96   : > { %484 = vmatpush1.msra.mxu0 %v339_v5 }
  0x97   : > { %485 = vmatprep.subr.mxu0 %v334_v6 }
  0x98   : > { %486 = vmatpush1.msra.mxu0 %v333_v7 }
  0x99   : > { %487 = vmatprep.subr.mxu0 %v328_v8 }
  0x9a   : > { %488 = vmatpush1.msra.mxu0 %v327_v9 }
  0x9b   : > { %489 = vmatprep.subr.mxu0 %v322_v10 }
  0x9c   : > { %490 = vmatpush1.msra.mxu0 %v321_v11 }
  0x9d   : > { %491 = vmatprep.subr.mxu0 %v316_v12 }
  0x9e   : > { %492 = vmatpush1.msra.mxu0 %v315_v13 }
  0x9f   : > { %493 = vmatprep.subr.mxu0 %v310_v14 }
  0xa0   : > { %494 = vmatpush1.msra.mxu0 %v309_v15 }
  0xa1   : > { %495 = vmatprep.subr.mxu0 %v304_v16 }
  0xa2   : > { %496 = vmatpush1.msra.mxu0 %v303_v17 }
  0xa3   : > { %497 = vmatprep.subr.mxu0 %v298_v18 }
  0xa4   : > { %498 = vmatpush1.msra.mxu0 %v297_v19 }
  0xa5   : > { %499 = vmatprep.subr.mxu0 %v292_v20 }
  0xa6   : > { %500 = vmatpush1.msra.mxu0 %v291_v21 }
  0xa7   : > { %501 = vmatprep.subr.mxu0 %v286_v22 }
  0xa8   : > { %502 = vmatpush1.msra.mxu0 %v285_v23 }
  0xa9   : > { %503 = vmatprep.subr.mxu0 %v280_v24 }
  0xaa   : > { %504 = vmatpush1.msra.mxu0 %v279_v25 }
  0xab   : > { %505 = vmatprep.subr.mxu0 %v274_v26 }
  0xac   : > { %506 = vmatpush1.msra.mxu0 %v273_v27 }
  0xad   : > { %507 = vmatprep.subr.mxu0 %v268_v28 }
  0xae   : > { %508 = vmatpush1.msra.mxu0 %v267_v29 }
  0xaf   : > { %509 = vmatprep.subr.mxu0 %v262_v30 }
  0xb0   : > { %510 = vmatpush1.msra.mxu0 %v261_v31 }
  0xb1   : > { %511 = vmatprep.subr.mxu0 %v256_v32 }
  0xb2   : > { %512 = vmatpush1.msra.mxu0 %v255_v33 }
  0xb3   : > { %513 = vmatprep.subr.mxu0 %v250_v34 }
  0xb4   : > { %514 = vmatpush1.msra.mxu0 %v249_v35 }
  0xb5   : > { %548 = vmatmul.mubr.f32.vlgmr.msra.gmra.mxu0 %v1808_v2 }
 0x154   : > { %v407_v39 = vpop.f32.mrf.mxu0  ;;  %v478_v40 = vpop.f32.mrf.mxu1 }
 0x156   : > { %v409_v43 = vpop.f32.mrf.mxu0  ;;  %v480_v44 = vpop.f32.mrf.mxu1 }
 0x157   : > { %v560_v45 = vcombine.low %v407_v39, %v409_v43  ;;  %v561_v47 = vcombine.low %v478_v40, %v480_v44 }
 0x159   : > { %v569_v48 = vrot.slane %v560_v45, %v568_v46  ;;  %v576_v49 = vrot.slane %v561_v47, %v568_v46 }
 0x15b   : > { %v584_v52 = vcombine.low %v569_v48, %v576_v49 }
 0x15d   : > { %v591_v55 = vrot.slane %v584_v52, %v568_v46 }
 0x175   : > { %v549_v50 = vpop.f32.mrf.mxu0 }
 0x177   : > { %v551_v51 = vpop.f32.mrf.mxu0 }
 0x178   : > { %v562_v53 = vcombine.low %v549_v50, %v551_v51 }
 0x17a   : > { %v583_v54 = vrot.slane %v562_v53, %v568_v46 }
 0x17c   : > { %v598_v56 = vrot.slane %v583_v54, %v568_v46 }
 0x17e   : > { %v599_v58 = vcombine.low %v591_v55, %v598_v56 }
 0x180   : > { %v601_v59 = vadd.f32 %v599_v58, %v243_v57 }
 0x182   : > { %606 = vst.msk [vmem:[#allocation2] sm:$0x3f] %vm604_vm1, %v601_v59 }
 0x183 PF: > { %p1243_p7 = scmp.ne.s32.totalorder %s1518_s15, 1 }
 0x185   : > { %610 = sbr.rel (%p1243_p7) target bundleno = 647 (0x287), region = 48 }
 0x18a   : > { %v693_v60 = vld [vmem:[%s1728_s23 + $0x188] sm:$0xff]  ;;  %v695_v61 = vld [vmem:[%s1728_s23 + $0x198] sm:$0xff]  ;;  %v692_v62 = vld [vmem:[%s1728_s23 + $0x180] sm:$0xff]  ;;  %v1543_v33 = vmov 0.0   ;;  %v1544_v52 = vmov 1966171168   ;;  %v1063_v54 = vlaneseq }
 0x18b   : > { %852 = vmatprep.subr.mxu0 %v693_v60  ;;  %923 = vmatprep.subr.mxu1 %v695_v61  ;;  %v694_v63 = vld [vmem:[%s1728_s23 + $0x190] sm:$0xff]  ;;  %v687_v0 = vld [vmem:[%s1728_s23 + $0x158] sm:$0xff]  ;;  %v689_v1 = vld [vmem:[%s1728_s23 + $0x168] sm:$0xff]  ;;  %v1061_v53 = vunpack.c.l.s4 %v1544_v52 }
 0x18c   : > { %853 = vmatpush1.msra.mxu0 %v692_v62  ;;  %924 = vmatpush1.msra.mxu1 %v694_v63  ;;  %v686_v2 = vld [vmem:[%s1728_s23 + $0x150] sm:$0xff]  ;;  %v688_v3 = vld [vmem:[%s1728_s23 + $0x160] sm:$0xff]  ;;  %v681_v4 = vld [vmem:[%s1728_s23 + $0x128] sm:$0xff]  ;;  %v1064_v58 = vshrl.u32 %v1063_v54, 7  ;;  %vm1101_vm2 = vcmp.lt.s32.totalorder %v1063_v54, 768 }
 0x18d   : > { %854 = vmatprep.subr.mxu0 %v687_v0  ;;  %925 = vmatprep.subr.mxu1 %v689_v1  ;;  %v683_v5 = vld [vmem:[%s1728_s23 + $0x138] sm:$0xff]  ;;  %v680_v6 = vld [vmem:[%s1728_s23 + $0x120] sm:$0xff]  ;;  %v682_v7 = vld [vmem:[%s1728_s23 + $0x130] sm:$0xff]  ;;  %v1062_v57 = vunpack.c.0.s8 %v1061_v53 }
 0x18e   : > { %855 = vmatpush1.msra.mxu0 %v686_v2  ;;  %926 = vmatpush1.msra.mxu1 %v688_v3  ;;  %v675_v8 = vld [vmem:[%s1728_s23 + $0xf8] sm:$0xff]  ;;  %v677_v9 = vld [vmem:[%s1728_s23 + $0x108] sm:$0xff]  ;;  %v674_v10 = vld [vmem:[%s1728_s23 + $0xf0] sm:$0xff] }
 0x18f   : > { %856 = vmatprep.subr.mxu0 %v681_v4  ;;  %927 = vmatprep.subr.mxu1 %v683_v5  ;;  %v676_v11 = vld [vmem:[%s1728_s23 + $0x100] sm:$0xff]  ;;  %v669_v12 = vld [vmem:[%s1728_s23 + $0xc8] sm:$0xff]  ;;  %v671_v13 = vld [vmem:[%s1728_s23 + $0xd8] sm:$0xff]  ;;  %v1065_v62 = vsub.s32 %v1062_v57, %v1064_v58 }
 0x190   : > { %857 = vmatpush1.msra.mxu0 %v680_v6  ;;  %928 = vmatpush1.msra.mxu1 %v682_v7  ;;  %v668_v14 = vld [vmem:[%s1728_s23 + $0xc0] sm:$0xff]  ;;  %v670_v15 = vld [vmem:[%s1728_s23 + $0xd0] sm:$0xff]  ;;  %v663_v16 = vld [vmem:[%s1728_s23 + $0x98] sm:$0xff] }
 0x191   : > { %858 = vmatprep.subr.mxu0 %v675_v8  ;;  %929 = vmatprep.subr.mxu1 %v677_v9  ;;  %v665_v17 = vld [vmem:[%s1728_s23 + $0xa8] sm:$0xff]  ;;  %v662_v18 = vld [vmem:[%s1728_s23 + $0x90] sm:$0xff]  ;;  %v664_v19 = vld [vmem:[%s1728_s23 + $0xa0] sm:$0xff] }
 0x192   : > { %859 = vmatpush1.msra.mxu0 %v674_v10  ;;  %930 = vmatpush1.msra.mxu1 %v676_v11  ;;  %v657_v20 = vld [vmem:[%s1728_s23 + $0x68] sm:$0xff]  ;;  %v659_v21 = vld [vmem:[%s1728_s23 + $0x78] sm:$0xff]  ;;  %v656_v22 = vld [vmem:[%s1728_s23 + $0x60] sm:$0xff] }
 0x193   : > { %860 = vmatprep.subr.mxu0 %v669_v12  ;;  %931 = vmatprep.subr.mxu1 %v671_v13  ;;  %v658_v23 = vld [vmem:[%s1728_s23 + $0x70] sm:$0xff]  ;;  %v651_v24 = vld [vmem:[%s1728_s23 + $0x38] sm:$0xff]  ;;  %v653_v25 = vld [vmem:[%s1728_s23 + $0x48] sm:$0xff] }
 0x194   : > { %861 = vmatpush1.msra.mxu0 %v668_v14  ;;  %932 = vmatpush1.msra.mxu1 %v670_v15  ;;  %v650_v26 = vld [vmem:[%s1728_s23 + $0x30] sm:$0xff]  ;;  %v652_v27 = vld [vmem:[%s1728_s23 + $0x40] sm:$0xff]  ;;  %v645_v28 = vld [vmem:[%s1728_s23 + $0x8] sm:$0xff] }
 0x195   : > { %862 = vmatprep.subr.mxu0 %v663_v16  ;;  %933 = vmatprep.subr.mxu1 %v665_v17  ;;  %v647_v29 = vld [vmem:[%s1728_s23 + $0x18] sm:$0xff]  ;;  %v644_v30 = vld [vmem:[%s1728_s23] sm:$0xff]  ;;  %v646_v31 = vld [vmem:[%s1728_s23 + $0x10] sm:$0xff] }
 0x196   : > { %863 = vmatpush1.msra.mxu0 %v662_v18  ;;  %934 = vmatpush1.msra.mxu1 %v664_v19  ;;  %v837_v32 = vld [vmem:[%s190_s14] sm:$0x1]  ;;  %v697_v34 = vld [vmem:[%s1728_s23 + $0x1a8] sm:$0xff]  ;;  %v696_v35 = vld [vmem:[%s1728_s23 + $0x1a0] sm:$0xff] }
 0x197   : > { %864 = vmatprep.subr.mxu0 %v657_v20  ;;  %935 = vmatprep.subr.mxu1 %v659_v21  ;;  %v691_v36 = vld [vmem:[%s1728_s23 + $0x178] sm:$0xff]  ;;  %v690_v37 = vld [vmem:[%s1728_s23 + $0x170] sm:$0xff]  ;;  %v685_v38 = vld [vmem:[%s1728_s23 + $0x148] sm:$0xff] }
 0x198   : > { %865 = vmatpush1.msra.mxu0 %v656_v22  ;;  %936 = vmatpush1.msra.mxu1 %v658_v23  ;;  %v684_v39 = vld [vmem:[%s1728_s23 + $0x140] sm:$0xff]  ;;  %v679_v40 = vld [vmem:[%s1728_s23 + $0x118] sm:$0xff]  ;;  %v678_v41 = vld [vmem:[%s1728_s23 + $0x110] sm:$0xff] }
 0x199   : > { %866 = vmatprep.subr.mxu0 %v651_v24  ;;  %937 = vmatprep.subr.mxu1 %v653_v25  ;;  %v673_v42 = vld [vmem:[%s1728_s23 + $0xe8] sm:$0xff]  ;;  %v672_v43 = vld [vmem:[%s1728_s23 + $0xe0] sm:$0xff]  ;;  %v667_v44 = vld [vmem:[%s1728_s23 + $0xb8] sm:$0xff] }
 0x19a   : > { %867 = vmatpush1.msra.mxu0 %v650_v26  ;;  %938 = vmatpush1.msra.mxu1 %v652_v27  ;;  %v666_v45 = vld [vmem:[%s1728_s23 + $0xb0] sm:$0xff]  ;;  %v661_v46 = vld [vmem:[%s1728_s23 + $0x88] sm:$0xff]  ;;  %v660_v47 = vld [vmem:[%s1728_s23 + $0x80] sm:$0xff] }
 0x19b   : > { %868 = vmatprep.subr.mxu0 %v645_v28  ;;  %939 = vmatprep.subr.mxu1 %v647_v29  ;;  %v655_v48 = vld [vmem:[%s1728_s23 + $0x58] sm:$0xff]  ;;  %v654_v49 = vld [vmem:[%s1728_s23 + $0x50] sm:$0xff]  ;;  %v649_v50 = vld [vmem:[%s1728_s23 + $0x28] sm:$0xff] }
 0x19c   : > { %869 = vmatpush1.msra.mxu0 %v644_v30  ;;  %902 = vmatprep.mubr.f32.mxu0 %v1543_v33  ;;  %v648_v51 = vld [vmem:[%s1728_s23 + $0x20] sm:$0xff]  ;;  %v836_v9 = vld [vmem:[#allocation2] sm:$0x3f] }
 0x19d   : > { %940 = vmatpush1.msra.mxu1 %v646_v31  ;;  %973 = vmatprep.mubr.f32.mxu1 %v1543_v33 }
 0x19e   : > { %903 = vmatmul.mubr.f32.vlgmr.msra.gmra.mxu0 %v837_v32  ;;  %974 = vmatmul.mubr.f32.vlgmr.msra.gmra.mxu1 %v837_v32 }
 0x19f   : > { %994 = vmatprep.subr.mxu0 %v697_v34  ;;  %1044 = vmatprep.mubr.f32.mxu0 %v1543_v33 }
 0x1a0   : > { %995 = vmatpush1.msra.mxu0 %v696_v35 }
 0x1a1   : > { %996 = vmatprep.subr.mxu0 %v691_v36 }
 0x1a2   : > { %997 = vmatpush1.msra.mxu0 %v690_v37 }
 0x1a3   : > { %998 = vmatprep.subr.mxu0 %v685_v38 }
 0x1a4   : > { %999 = vmatpush1.msra.mxu0 %v684_v39 }
 0x1a5   : > { %1000 = vmatprep.subr.mxu0 %v679_v40 }
 0x1a6   : > { %1001 = vmatpush1.msra.mxu0 %v678_v41 }
 0x1a7   : > { %1002 = vmatprep.subr.mxu0 %v673_v42 }
 0x1a8   : > { %1003 = vmatpush1.msra.mxu0 %v672_v43 }
 0x1a9   : > { %1004 = vmatprep.subr.mxu0 %v667_v44 }
 0x1aa   : > { %1005 = vmatpush1.msra.mxu0 %v666_v45 }
 0x1ab   : > { %1006 = vmatprep.subr.mxu0 %v661_v46 }
 0x1ac   : > { %1007 = vmatpush1.msra.mxu0 %v660_v47 }
 0x1ad   : > { %1008 = vmatprep.subr.mxu0 %v655_v48 }
 0x1ae   : > { %1009 = vmatpush1.msra.mxu0 %v654_v49 }
 0x1af   : > { %1010 = vmatprep.subr.mxu0 %v649_v50 }
 0x1b0   : > { %1011 = vmatpush1.msra.mxu0 %v648_v51 }
 0x1b1   : > { %1045 = vmatmul.mubr.f32.vlgmr.msra.gmra.mxu0 %v837_v32 }
 0x25e   : > { %v904_v55 = vpop.f32.mrf.mxu0  ;;  %v975_v56 = vpop.f32.mrf.mxu1 }
 0x260   : > { %v906_v59 = vpop.f32.mrf.mxu0  ;;  %v977_v60 = vpop.f32.mrf.mxu1 }
 0x261   : > { %v1057_v61 = vcombine.low %v904_v55, %v906_v59  ;;  %v1058_v63 = vcombine.low %v975_v56, %v977_v60 }
 0x263   : > { %v1066_v0 = vrot.slane %v1057_v61, %v1065_v62  ;;  %v1073_v1 = vrot.slane %v1058_v63, %v1065_v62 }
 0x265   : > { %v1081_v4 = vcombine.low %v1066_v0, %v1073_v1 }
 0x267   : > { %v1088_v7 = vrot.slane %v1081_v4, %v1065_v62 }
 0x271   : > { %v1046_v2 = vpop.f32.mrf.mxu0 }
 0x273   : > { %v1048_v3 = vpop.f32.mrf.mxu0 }
 0x274   : > { %v1059_v5 = vcombine.low %v1046_v2, %v1048_v3 }
 0x276   : > { %v1080_v6 = vrot.slane %v1059_v5, %v1065_v62 }
 0x278   : > { %v1095_v8 = vrot.slane %v1080_v6, %v1065_v62 }
 0x27a   : > { %v1096_v10 = vcombine.low %v1088_v7, %v1095_v8 }
 0x27c   : > { %v1098_v11 = vadd.f32 %v1096_v10, %v836_v9 }
 0x27e   : > { %1103 = vst.msk [vmem:[#allocation2] sm:$0x3f] %vm1101_vm2, %v1098_v11 }
 0x285   : > { %v1104_v12 = vld [vmem:[#allocation2] sm:$0x3f] }
 0x286   : > { %1105 = vst.msk [vmem:[%s223_s20] sm:$0x3f] %vm1101_vm2, %v1104_v12 }
 0x287 PF: > { %s1252_s15 = smul.u32 96, %s1522_s16  ;;  %s1121_s28 = sshll.u32 %s223_s20, 4  ;;  %s1122_s28 = int_to_ptr.vmem [resolvable:$true] %s1121_s28 }
 0x288   : > { %s1107_s27 = scalar_lea.sflag [#allocation5], %s221_s21  ;;  %s1410_s29 = scalar_lea.vmem %s1122_s28, 96 }
 0x289   : > { %s1119_s25 = scalar_lea.hbm %s1963_s2, %s1252_s15  ;;  %p1411_p9 = scmp.ne.s32.totalorder %s1122_s28, %s1410_s29 }
 0x28a   : > { %s1545_s30 = smov [#allocation8]  }
 0x28b   : > { %p1412_p10 = pnand %p1411_p9, %p1643_p12  ;;  %s1414_s8 = sshll.u32 %s1545_s30, 4  ;;  %s1415_s8 = int_to_ptr.vmem [resolvable:$false] %s1414_s8 }
 0x28c   : > { %s1416_s22 = scalar_lea.vmem %s1415_s8, 192  ;;  %p1417_p13 = scmp.lt.s32.totalorder %s1122_s28, %s1415_s8 }
 0x28d   : > { %p1413_p11 = pneg %p1412_p10  ;;  %p1418_p0 = scmp.lt.s32.totalorder %s1416_s22, %s1410_s29 }
 0x28f   : > { %p1419_p2 = por %p1418_p0, %p1417_p13 }
 0x291   : > { %p1420_p4 = pnand %p1419_p2, %p1413_p11 }
 0x293   : > { %1423 = shalt.err (!%p1420_p4)
}
 0x294   : > { %s1424_s16 = scalar_lea.hbm %s1119_s25, 96  ;;  %s1428_s5 = scalar_lea.hbm %s1963_s2, 192 }
 0x295   : > { %p1425_p5 = scmp.ne.s32.totalorder %s1119_s25, %s1424_s16  ;;  %p1429_p8 = scmp.lt.s32.totalorder %s1119_s25, %s1963_s2 }
 0x296   : > { %p1430_p7 = scmp.lt.s32.totalorder %s1428_s5, %s1424_s16 }
 0x297   : > { %p1426_p6 = pnand %p1425_p5, %p1643_p12 }
 0x298   : > { %p1431_p9 = por %p1430_p7, %p1429_p8 }
 0x299   : > { %p1427_p3 = pneg %p1426_p6 }
 0x29b   : > { %p1432_p10 = pnand %p1431_p9, %p1427_p3 }
 0x29d   : > { %1435 = shalt.err (!%p1432_p10)
}
 0x29e   : > { %1256 = dma.vmem_to_hbm [thread:$0]  (%p1643_p12), %s1122_s28, 96, %s1119_s25, %s1107_s27  }
 0x29f PF: > { %p1262_p11 = scmp.ge.s32.totalorder %s1534_s19, 2  ;;  %s1133_s12 = sand.u32 1, %s1494_s9  }
 0x2a0   : > { %s1134_s20 = scalar_lea.sflag [#allocation5], %s1133_s12 }
 0x2a1   : > { %p1259_p13 = pnand %p1262_p11, %p1655_p1 }
 0x2a3   : > { %p1260_p0 = pneg %p1259_p13 }
 0x2a5   : > { %1489 = dma.done.wait (%p1260_p0), %s1134_s20, 96  }
 0x2a6   : > { %1491 = vsyncadd (%p1260_p0), %s1134_s20, 4294967200  ;;  %s21_s19 = sadd.s32 1, %s1534_s19   ;;  %s1975_s3 = sld [smem:[#allocation12_spill]] }
 0x2a7   : > { %p18_p2 = scmp.ge.s32.totalorder %s21_s19, 6   ;;  %s1976_s14 = sld [smem:[#allocation15_spill]] }
 0x2a8   : > { %s1977_s28 = sld [smem:[#allocation13_spill]]  ;;  %s1979_s9 = smov %s1498_s10 }
 0x2a9   : > { %s1978_s26 = sld [smem:[#allocation14_spill]]  ;;  %s1980_s10 = smov %s1502_s11 }
 0x2aa   : > { %s1981_s11 = smov %s1648_s4  ;;  %s1982_s12 = smov %s1510_s13 }
 0x2ab   : > { %s1984_s15 = smov %s1526_s17  ;;  %s1985_s16 = smov %s1530_s18 }
 0x2ac   : > { %s1983_s13 = smov %s1975_s3  ;;  %20 = sbr.rel (!%p18_p2) target bundleno = 11 (0xb), region = 98 }
 0x2ae   : > { %s1986_s17 = smov %s1977_s28 }
 0x2af   : > { %s1987_s18 = smov %s1978_s26 }
 0x2b1   :  { %1139 = vsyncpa [#allocation4], 1 }
 0x2b2   :  { %1141 = vsyncpa [#allocation4 + $0x1], 1 }
 0x2b3   :  { %1142 = vsyncpa [#allocation7], 1 }
 0x2b4   :  { %1144 = vsyncpa [#allocation7 + $0x1], 1 }
 0x2b5   :  { %1145 = vsyncpa [#allocation5], 1 }
 0x2b6   :  { %1147 = vsyncpa [#allocation5 + $0x1], 1 }

</bundles_post_ra>
